<compile_context>
chip_gen: v6e
topology: v6e:2x2x1
jax: 0.10.0
libtpu: 0.0.40
codegen_flags: <defaults>
</compile_context>

<pallas_src>
import jax
import jax.numpy as jnp
from jax import lax
from jax.experimental import pallas as pl
from jax.experimental.pallas import tpu as pltpu

NEG_SLOPE = 0.01   # nn.LeakyReLU default
BN_EPS = 1e-5      # nn.BatchNorm1d default
_LANE = 128


def _round_up(v, m):
    return ((v + m - 1) // m) * m


def _lin_lrelu_bn_kernel(x_ref, w_ref, p_ref, o_ref):
    # x: [N, nci], w: [nci, tn] (lane-dense, canonical MXU [K, N] layout).
    y = lax.dot_general(
        x_ref[...], w_ref[...],
        dimension_numbers=(((1,), (0,)), ((), ())),
        preferred_element_type=jnp.float32,
    )                                            # [N, tn] f32 accumulator

    params = p_ref[...].astype(jnp.float32)      # [3, tn]: bias, gamma, beta
    bias = params[0:1, :]
    gamma = params[1:2, :]
    beta = params[2:3, :]

    y = y + bias                                 # Linear bias
    y = jnp.maximum(y, NEG_SLOPE * y)            # LeakyReLU (mul + max)

    # BatchNorm1d, training mode: biased batch statistics over the batch axis.
    # Two-pass (centered) variance: y is resident, so the extra pass is pure
    # VPU work and avoids the E[y^2] - mean^2 cancellation issue.
    inv_n = jnp.float32(1.0 / y.shape[0])
    mean = jnp.sum(y, axis=0, keepdims=True) * inv_n
    yc = y - mean
    var = jnp.sum(yc * yc, axis=0, keepdims=True) * inv_n
    scale = gamma * lax.rsqrt(var + BN_EPS)
    o_ref[...] = (yc * scale + beta).astype(o_ref.dtype)


def prepare_params(weight, bias, gamma, beta):
    """One-time, init-time parameter prep (hoisted out of the per-call path).

    weight: [nco, nci] (PyTorch layout) -> [nci, nco_p] pre-transposed + padded
    so the kernel's weight tile is lane-dense.  bias/gamma/beta are packed into
    one [3, nco_p] array (a single DMA instead of three).
    Returns (w_t, params, nco).
    """
    nco, nci = weight.shape
    nco_p = _round_up(nco, _LANE)
    w_t = weight.T                                   # [nci, nco]
    params = jnp.stack([bias, gamma, beta], axis=0)  # [3, nco]
    if nco_p != nco:
        pad = nco_p - nco
        w_t = jnp.pad(w_t, ((0, 0), (0, pad)))
        params = jnp.pad(params, ((0, 0), (0, pad)))
    return w_t, params, nco


def linear_leakyrelu_bn(x, w_t, params, nco):
    """x: [N, nci]; w_t: [nci, nco_p]; params: [3, nco_p] = (bias, gamma, beta)."""
    n, nci = x.shape
    nco_p = w_t.shape[1]

    # Per-generation VMEM budget: physical capacity minus ~16 MiB headroom
    # (=> ~48 MiB on v7x's 64 MiB/TC, ~112 MiB on v5e/v6e's 128 MiB).
    try:
        vmem_cap = int(pltpu.get_tpu_info().vmem_capacity_bytes)
    except Exception:
        vmem_cap = 64 * 1024 * 1024
    vmem_limit = max(32 * 1024 * 1024,
                     min(vmem_cap - 16 * 1024 * 1024, 112 * 1024 * 1024))

    small_n = n <= 64                      # weight-DMA-bound regime
    w_bufs = 3 if small_n else 2
    x_bytes = n * nci * x.dtype.itemsize   # single-buffered resident x
    budget = int(0.8 * vmem_limit)

    def _fits(t):
        need = (x_bytes
                + w_bufs * nci * t * w_t.dtype.itemsize   # weight tiles
                + 2 * 3 * t * params.dtype.itemsize       # packed params tiles
                + 2 * n * t * x.dtype.itemsize            # output tiles
                + 2 * n * t * 4)                          # in-kernel f32 y / yc
        return need <= budget

    # Tile only the output-feature axis (BN stats are per-feature, so this is
    # exactly parallel).  Prefer large lane-dense tiles, but keep >= 2 tiles so
    # the "parallel" axis spans both v7x TensorCores whenever nco_p > 128.
    candidates = [c for c in (1024, 512, 256, 128) if c <= nco_p and nco_p % c == 0]
    tn = None
    for c in candidates:
        if nco_p // c >= 2 and _fits(c):
            tn = c
            break
    if tn is None:
        tn = candidates[-1]                # nco_p == 128 (or nothing fits): 128
    grid = (nco_p // tn,)

    # TODO(synk): for N large enough that x plus the [N, tn] f32 y tile no
    # longer fit the VMEM budget, stream N-chunks with a nested
    # pltpu.emit_pipeline and accumulate sum/sumsq in [1, tn] VMEM scratch
    # (do NOT grid N naively -- that would change the BN statistics).

    def _build(use_pipeline_hints):
        kw_x = {"pipeline_mode": pl.Buffered(1)} if use_pipeline_hints else {}
        kw_w = {"pipeline_mode": pl.Buffered(w_bufs)} if use_pipeline_hints else {}
        return pl.pallas_call(
            _lin_lrelu_bn_kernel,
            out_shape=jax.ShapeDtypeStruct((n, nco_p), x.dtype),
            grid_spec=pltpu.PrefetchScalarGridSpec(
                num_scalar_prefetch=0,
                grid=grid,
                in_specs=[
                    # x is grid-invariant: resident, single-buffered.
                    pl.BlockSpec((n, nci), lambda j: (0, 0), **kw_x),
                    # Lane-dense [K, tn] weight tile (canonical MXU layout).
                    pl.BlockSpec((nci, tn), lambda j: (0, j), **kw_w),
                    # Packed bias/gamma/beta.
                    pl.BlockSpec((3, tn), lambda j: (0, j)),
                ],
                out_specs=pl.BlockSpec((n, tn), lambda j: (0, j)),
            ),
            compiler_params=pltpu.CompilerParams(
                dimension_semantics=("parallel",),      # megacore / 2-TC sharding
                vmem_limit_bytes=vmem_limit,
            ),
        )

    try:
        out = _build(True)(x, w_t, params)
    except Exception:
        # pipeline_mode hints are an optimization only; fall back cleanly if
        # this JAX build does not accept them on the main pallas_call grid.
        out = _build(False)(x, w_t, params)

    if nco != nco_p:
        # For production, consider returning the padded [N, nco_p] slab and
        # letting the consumer fuse the slice instead of paying it here.
        out = out[:, :nco]
    return out


def _reference(x, weight, bias, gamma, beta):
    y = x @ weight.T + bias
    y = jnp.where(y >= 0, y, NEG_SLOPE * y)
    mean = jnp.mean(y, axis=0, keepdims=True)
    var = jnp.mean((y - mean) ** 2, axis=0, keepdims=True)
    return (y - mean) / jnp.sqrt(var + BN_EPS) * gamma + beta


if __name__ == "__main__":
    key = jax.random.PRNGKey(0)
    N, nci, nco = 8, 32, 64

    kx, kw, kb = jax.random.split(key, 3)
    x = jax.random.normal(kx, (N, nci), dtype=jnp.float32)

    # Deterministic parameter init (PyTorch Linear-style uniform bound).
    bound = float(nci) ** -0.5
    weight = jax.random.uniform(kw, (nco, nci), jnp.float32, -bound, bound)
    bias = jax.random.uniform(kb, (nco,), jnp.float32, -bound, bound)
    gamma = jnp.ones((nco,), jnp.float32)   # BatchNorm1d affine init
    beta = jnp.zeros((nco,), jnp.float32)

    # One-time (init-time) prep: pad + pre-transpose weight, pack BN params.
    w_t, params, nco_out = prepare_params(weight, bias, gamma, beta)

    out = linear_leakyrelu_bn(x, w_t, params, nco_out)
    jax.block_until_ready(out)

    ref = _reference(x, weight, bias, gamma, beta)
    assert out.shape == (N, nco)
    assert jnp.allclose(out, ref, atol=1e-4, rtol=1e-4)
    print("KERNEL_OK")
</pallas_src>

<mosaic_0001>
module attributes {stable_mosaic.version = 11 : i64} {
  func.func @_lin_lrelu_bn_kernel(%arg0: i32, %arg1: memref<8x32xf32, #tpu.memory_space<vmem>>, %arg2: memref<32x128xf32, #tpu.memory_space<vmem>>, %arg3: memref<3x128xf32, #tpu.memory_space<vmem>>, %arg4: memref<8x128xf32, #tpu.memory_space<vmem>>) attributes {dimension_semantics = [#tpu.dimension_semantics<parallel>], iteration_bounds = array<i64: 1>, scalar_prefetch = 0 : i64, scratch_operands = 0 : i64, tpu.core_type = #tpu.core_type<tc>, window_params = [{pipeline_mode = #tpu.pipeline_mode<synchronous>, transform_indices = @transform_0, window_bounds = array<i64: 8, 32>}, {transform_indices = @transform_1, window_bounds = array<i64: 32, 128>}, {transform_indices = @transform_2, window_bounds = array<i64: 3, 128>}, {transform_indices = @transform_3, window_bounds = array<i64: 8, 128>}]} {
    %c0 = arith.constant 0 : index
    %c0_0 = arith.constant 0 : index
    %0 = vector.load %arg1[%c0, %c0_0] : memref<8x32xf32, #tpu.memory_space<vmem>>, vector<8x32xf32>
    %c0_1 = arith.constant 0 : index
    %c0_2 = arith.constant 0 : index
    %1 = vector.load %arg2[%c0_1, %c0_2] : memref<32x128xf32, #tpu.memory_space<vmem>>, vector<32x128xf32>
    %cst = arith.constant dense<0.000000e+00> : vector<8x128xf32>
    %2 = tpu.matmul %0, %1, %cst {dimension_numbers = #tpu.dot_dimension_numbers<[1], [0], [0], [1], [0, 0, 1, 1], [], []>} : vector<8x32xf32>, vector<32x128xf32>, vector<8x128xf32> -> vector<8x128xf32>
    %c0_3 = arith.constant 0 : index
    %c0_4 = arith.constant 0 : index
    %3 = vector.load %arg3[%c0_3, %c0_4] : memref<3x128xf32, #tpu.memory_space<vmem>>, vector<3x128xf32>
    %4 = vector.extract_strided_slice %3 {offsets = [0, 0], sizes = [1, 128], strides = [1, 1]} : vector<3x128xf32> to vector<1x128xf32>
    %5 = vector.extract_strided_slice %3 {offsets = [1, 0], sizes = [1, 128], strides = [1, 1]} : vector<3x128xf32> to vector<1x128xf32>
    %6 = vector.extract_strided_slice %3 {offsets = [2, 0], sizes = [1, 128], strides = [1, 1]} : vector<3x128xf32> to vector<1x128xf32>
    %7 = vector.broadcast %4 : vector<1x128xf32> to vector<8x128xf32>
    %8 = arith.addf %2, %7 : vector<8x128xf32>
    %cst_5 = arith.constant 0.00999999977 : f32
    %9 = vector.broadcast %cst_5 : f32 to vector<8x128xf32>
    %10 = arith.mulf %9, %8 : vector<8x128xf32>
    %11 = arith.maximumf %8, %10 : vector<8x128xf32>
    %cst_6 = arith.constant dense<0.000000e+00> : vector<128xf32>
    %12 = vector.multi_reduction <add>, %11, %cst_6 [0] : vector<8x128xf32> to vector<128xf32>
    %13 = vector.shape_cast %12 : vector<128xf32> to vector<1x128xf32>
    %cst_7 = arith.constant 1.250000e-01 : f32
    %14 = vector.broadcast %cst_7 : f32 to vector<1x128xf32>
    %15 = arith.mulf %13, %14 : vector<1x128xf32>
    %16 = vector.broadcast %15 : vector<1x128xf32> to vector<8x128xf32>
    %17 = arith.subf %11, %16 : vector<8x128xf32>
    %18 = arith.mulf %17, %17 : vector<8x128xf32>
    %cst_8 = arith.constant dense<0.000000e+00> : vector<128xf32>
    %19 = vector.multi_reduction <add>, %18, %cst_8 [0] : vector<8x128xf32> to vector<128xf32>
    %20 = vector.shape_cast %19 : vector<128xf32> to vector<1x128xf32>
    %cst_9 = arith.constant 1.250000e-01 : f32
    %21 = vector.broadcast %cst_9 : f32 to vector<1x128xf32>
    %22 = arith.mulf %20, %21 : vector<1x128xf32>
    %cst_10 = arith.constant 9.99999974E-6 : f32
    %23 = vector.broadcast %cst_10 : f32 to vector<1x128xf32>
    %24 = arith.addf %22, %23 : vector<1x128xf32>
    %25 = math.rsqrt %24 : vector<1x128xf32>
    %26 = arith.mulf %5, %25 : vector<1x128xf32>
    %27 = vector.broadcast %26 : vector<1x128xf32> to vector<8x128xf32>
    %28 = arith.mulf %17, %27 : vector<8x128xf32>
    %29 = vector.broadcast %6 : vector<1x128xf32> to vector<8x128xf32>
    %30 = arith.addf %28, %29 : vector<8x128xf32>
    %c0_11 = arith.constant 0 : index
    %c0_12 = arith.constant 0 : index
    %31 = vector.load %arg4[%c0_11, %c0_12] : memref<8x128xf32, #tpu.memory_space<vmem>>, vector<8x128xf32>
    tpu.vector_store %arg4[%c0_11, %c0_12], %30 {strides = array<i32>} : memref<8x128xf32, #tpu.memory_space<vmem>>, vector<8x128xf32>,
    return
  }
  func.func @transform_0(%arg0: i32) -> (i32, i32) {
    %c0_i32 = arith.constant 0 : i32
    %c0_i32_0 = arith.constant 0 : i32
    %c0_i32_1 = arith.constant 0 : i32
    return %c0_i32, %c0_i32_0 : i32, i32
  }
  func.func @transform_1(%arg0: i32) -> (i32, i32) {
    %c0_i32 = arith.constant 0 : i32
    %c0_i32_0 = arith.constant 0 : i32
    return %c0_i32, %arg0 : i32, i32
  }
  func.func @transform_2(%arg0: i32) -> (i32, i32) {
    %c0_i32 = arith.constant 0 : i32
    %c0_i32_0 = arith.constant 0 : i32
    return %c0_i32, %arg0 : i32, i32
  }
  func.func @transform_3(%arg0: i32) -> (i32, i32) {
    %c0_i32 = arith.constant 0 : i32
    %c0_i32_0 = arith.constant 0 : i32
    return %c0_i32, %arg0 : i32, i32
  }
}

</mosaic_0001>

<bundles_post_ra>
// kernel: tpu_custom_call.1
= control target key start
LH: loop header
LB: loop body
LE: loop exit
PB: predicated region body
PF: predicated region fallthrough
CT: control target
= control target key end

     0   :  { %8 = vsyncpa [#allocation3], 0  ;;  %s337_s0 = inlined_call_operand.hbm [shape: f32[8,32], index: 0, kind: input, shape index: {}]   ;;  %s338_s1 = inlined_call_operand.hbm [shape: f32[32,128], index: 1, kind: input, shape index: {}]   ;;  %s339_s2 = inlined_call_operand.hbm [shape: f32[3,128], index: 2, kind: input, shape index: {}]   ;;  %s340_s3 = inlined_call_operand.hbm [shape: f32[8,128], index: 3, kind: output, shape index: {}]  }
   0x1   :  { %9 = vsyncpa [#allocation6], 0 }
   0x2   :  { %10 = vsyncpa [#allocation4], 0  ;;  %s297_s12 = smov [#allocation5]  }
   0x3   :  { %s26_s13 = sshll.u32 %s297_s12, 4  ;;  %s27_s13 = int_to_ptr.vmem [resolvable:$true] %s26_s13 }
   0x4   :  { %s219_s14 = scalar_lea.vmem %s27_s13, 512  ;;  %p224_p1 = scmp.lt.s32.totalorder %s27_s13, %s27_s13 }
   0x5   :  { %p220_p0 = scmp.ne.s32.totalorder %s27_s13, %s219_s14  ;;  %p225_p2 = scmp.lt.s32.totalorder %s219_s14, %s219_s14 }
   0x7   :  { %p226_p3 = por %p225_p2, %p224_p1 }
   0x9   :  { %p227_p4 = pnand %p226_p3, %p220_p0 }
   0xb   :  { %230 = shalt.err (!%p227_p4)
}
   0xc   :  { %s298_s15 = smov 128   ;;  %s299_s16 = smov 8  }
   0xd   :  { %32 = dma.hbm_to_vmem [thread:$0]  %s338_s1, 512, %s27_s13, [#allocation6], %s298_s15, %s298_s15, %s299_s16  }
   0xe   :  { %s300_s19 = smov [#allocation2]   ;;  %s301_s21 = smov [#allocation7]  }
   0xf   :  { %s17_s20 = sshll.u32 %s300_s19, 4  ;;  %s39_s22 = sshll.u32 %s301_s21, 4  ;;  %s18_s20 = int_to_ptr.vmem [resolvable:$true] %s17_s20  ;;  %s40_s22 = int_to_ptr.vmem [resolvable:$true] %s39_s22 }
  0x10   :  { %s239_s23 = scalar_lea.vmem %s18_s20, 128  ;;  %p244_p6 = scmp.lt.s32.totalorder %s18_s20, %s18_s20 }
  0x11   :  { %p240_p5 = scmp.ne.s32.totalorder %s18_s20, %s239_s23  ;;  %p245_p7 = scmp.lt.s32.totalorder %s239_s23, %s239_s23 }
  0x13   :  { %p246_p8 = por %p245_p7, %p244_p6 }
  0x15   :  { %p247_p9 = pnand %p246_p8, %p240_p5 }
  0x17   :  { %250 = shalt.err (!%p247_p9)
}
  0x18   :  { %20 = dma.hbm_to_vmem [thread:$0]  %s337_s0, 128, %s18_s20, [#allocation3]  }
  0x19   :  { %s259_s26 = scalar_lea.vmem %s40_s22, 64  ;;  %p264_p11 = scmp.lt.s32.totalorder %s40_s22, %s40_s22 }
  0x1a   :  { %p260_p10 = scmp.ne.s32.totalorder %s40_s22, %s259_s26  ;;  %p265_p12 = scmp.lt.s32.totalorder %s259_s26, %s259_s26 }
  0x1c   :  { %p266_p13 = por %p265_p12, %p264_p11 }
  0x1e   :  { %p267_p0 = pnand %p266_p13, %p260_p10 }
  0x20   :  { %270 = shalt.err (!%p267_p0)
}
  0x21   :  { %42 = dma.hbm_to_vmem [thread:$0]  %s339_s2, 64, %s40_s22, [#allocation6]  }
  0x22   :  { %291 = dma.done.wait [#allocation3], 128  }
  0x23   :  { %292 = vsyncadd [#allocation3], 4294967168 }
  0x24   :  { %293 = dma.done.wait [#allocation6], 576  }
  0x25   :  { %294 = vsyncadd [#allocation6], 4294966720  ;;  %v302_v0 = vmov 0.0   ;;  %vm303_vm0 = vmmov 0   ;;  %v56_v1 = vld [vmem:[#allocation5 + $0x18] sm:$0xff]  ;;  %v55_v2 = vld [vmem:[#allocation5 + $0x10] sm:$0xff]  ;;  %v58_v6 = vlaneseq }
  0x26   :  { %190 = vmatprep.subr.mxu0 %v302_v0  ;;  %198 = vmatprep.mubr.msk.f32.mxu0 %vm303_vm0, %v302_v0  ;;  %v54_v3 = vld [vmem:[#allocation5 + $0x8] sm:$0xff]  ;;  %v53_v4 = vld [vmem:[#allocation5] sm:$0xff]  ;;  %v52_v5 = vld [vmem:[#allocation2] sm:$0xff]  ;;  %vm62_vm1 = vcmask 261120   ;;  %s304_s0 = smov [#allocation8]  }
  0x27   :  { %191 = vmatpush3.msra.mxu0 %v56_v1  ;;  %v59_v7 = vshrl.u32 %v58_v6, 7  ;;  %v57_v9 = vld [vmem:[#allocation7] sm:$0x7]  ;;  %s174_s2 = sshll.u32 %s304_s0, 4  ;;  %s175_s2 = int_to_ptr.vmem [resolvable:$true] %s174_s2 }
  0x28   :  { %192 = vmatprep.subr.mxu0 %v302_v0  ;;  %s271_s28 = scalar_lea.vmem %s175_s2, 128  ;;  %p276_p2 = scmp.lt.s32.totalorder %s175_s2, %s175_s2 }
  0x29   :  { %193 = vmatpush3.msra.mxu0 %v55_v2  ;;  %v60_v8 = vsub.s32 0, %v59_v7  ;;  %v159_v33 = vsub.s32 1, %v59_v7  ;;  %v164_v34 = vsub.s32 2, %v59_v7  ;;  %p272_p1 = scmp.ne.s32.totalorder %s175_s2, %s271_s28  ;;  %p277_p3 = scmp.lt.s32.totalorder %s271_s28, %s271_s28 }
  0x2a   :  { %194 = vmatprep.subr.mxu0 %v302_v0 }
  0x2b   :  { %195 = vmatpush3.msra.mxu0 %v54_v3  ;;  %v61_v10 = vrot.slane %v57_v9, %v60_v8  ;;  %v165_v38 = vrot.slane %v57_v9, %v164_v34  ;;  %p278_p4 = por %p277_p3, %p276_p2 }
  0x2c   :  { %196 = vmatprep.subr.mxu0 %v302_v0 }
  0x2d   :  { %197 = vmatpush3.msra.mxu0 %v53_v4  ;;  %p279_p5 = pnand %p278_p4, %p272_p1 }
  0x2e   :  { %199 = vmatmul.mubr.msk.f32.vlgmr.msra.gmra.mxu0 %vm62_vm1, %v52_v5 }
  0xee   :  { %v132_v11 = vpop.f32.mrf.mxu0 }
  0xef   :  { %v133_v12 = vadd.f32 %v132_v11, %v61_v10 }
  0xf0   :  { %v200_v13 = vpop.f32.mrf.mxu0 }
  0xf1   :  { %v136_v14 = vmul.f32 0.01, %v133_v12 }
  0xf3   :  { %v137_v15 = vmax.f32 %v133_v12, %v136_v14 }
  0xf5   :  { %v138_v16 = vrot.slane %v137_v15, 4 }
  0xf7   :  { %v139_v17 = vadd.f32 %v138_v16, %v137_v15 }
  0xf9   :  { %v140_v18 = vrot.slane %v139_v17, 2 }
  0xfb   :  { %v141_v19 = vadd.f32 %v140_v18, %v139_v17 }
  0xfd   :  { %v142_v20 = vrot.slane %v141_v19, 1 }
  0xff   :  { %v143_v21 = vadd.f32 %v142_v20, %v141_v19 }
 0x101   :  { %v144_v22 = vmul.f32 0.125, %v143_v21 }
 0x103   :  { %v145_v23 = vsub.f32 %v137_v15, %v144_v22 }
 0x105   :  { %v146_v24 = vmul.f32 %v145_v23, %v145_v23 }
 0x107   :  { %v147_v25 = vrot.slane %v146_v24, 4 }
 0x109   :  { %v148_v26 = vadd.f32 %v147_v25, %v146_v24 }
 0x10b   :  { %v149_v27 = vrot.slane %v148_v26, 2 }
 0x10d   :  { %v150_v28 = vadd.f32 %v149_v27, %v148_v26 }
 0x10f   :  { %v151_v29 = vrot.slane %v150_v28, 1 }
 0x111   :  { %v152_v30 = vadd.f32 %v151_v29, %v150_v28 }
 0x113   :  { %v153_v31 = vmul.f32 0.125, %v152_v30 }
 0x115   :  { %v154_v32 = vadd.f32 1e-05, %v153_v31 }
 0x117   :  { %209 = vrsqrt.f32 %v154_v32 }
 0x124   :  { %v210_v35 = vpop.eup %209 }
 0x125   :  { %v156_v36 = vmul.f32 %v210_v35, %v57_v9 }
 0x127   :  { %v160_v37 = vrot.slane %v156_v36, %v159_v33 }
 0x129   :  { %v161_v39 = vmul.f32 %v160_v37, %v145_v23 }
 0x12b   :  { %v166_v40 = vadd.f32 %v165_v38, %v161_v39 }
 0x12d   :  { %167 = vst [vmem:[#allocation8] sm:$0xff] %v166_v40 }
 0x12e   :  { %282 = shalt.err (!%p279_p5)
}
 0x12f   :  { %177 = dma.vmem_to_hbm [thread:$0]  %s175_s2, 128, %s340_s3, [#allocation4]  }
 0x130   :  { %295 = dma.done.wait [#allocation4], 128  }
 0x131   :  { %296 = vsyncadd [#allocation4], 4294967168 }
 0x132   :  { %181 = vsyncpa [#allocation3], 1 }
 0x133   :  { %182 = vsyncpa [#allocation6], 1 }
 0x134   :  { %183 = vsyncpa [#allocation4], 1 }

</bundles_post_ra>
